<compile_context>
chip_gen: v5e
topology: v5e:2x2
jax: 0.10.0
libtpu: 0.0.40
codegen_flags: <defaults>
</compile_context>

<pallas_src>
import functools

import jax
import jax.numpy as jnp
from jax.experimental import pallas as pl
from jax.experimental.pallas import tpu as pltpu

LANES = 128
MAX_BLOCK_ROWS = 8192               # 8192 x 128 f32 = 4 MiB per input block
VMEM_LIMIT_BYTES = 48 * 1024 * 1024  # < 64 MiB physical on v7x; >16 MiB v5e default
SMALL_INPUT_BYTES = 2 * 1024 * 1024  # below this, plain jnp is faster than a launch


def _focal_tversky_partials_kernel(x_ref, t_ref, pt_ref, p_ref, tsum_ref, *,
                                   block_rows, n_valid, need_mask, unroll):
    i = pl.program_id(0)

    # Zero the resident (8,128) accumulators on the first grid step.
    @pl.when(i == 0)
    def _init():
        pt_ref[...] = jnp.zeros_like(pt_ref)
        p_ref[...] = jnp.zeros_like(p_ref)
        tsum_ref[...] = jnp.zeros_like(tsum_ref)

    groups = block_rows // 8
    base_row = i * block_rows          # first row of this block in (rows,128) view

    def make_body(masked):
        def body(g, carry):
            acc_pt, acc_p, acc_t = carry
            r = pl.multiple_of(g * 8, 8)
            x = x_ref[pl.ds(r, 8), :].astype(jnp.float32)
            t = t_ref[pl.ds(r, 8), :].astype(jnp.float32)
            p = jax.nn.sigmoid(x)
            if masked:
                # Element-level tail mask: flat index into the original flat
                # array must be < n. Select (not multiply) so garbage / pad
                # values in the out-of-bounds region cannot propagate.
                flat = ((base_row + r) * LANES
                        + jax.lax.broadcasted_iota(jnp.int32, (8, LANES), 0) * LANES
                        + jax.lax.broadcasted_iota(jnp.int32, (8, LANES), 1))
                valid = flat < n_valid
                p = jnp.where(valid, p, 0.0)
                t = jnp.where(valid, t, 0.0)
            return (acc_pt + p * t, acc_p + p, acc_t + t)
        return body

    def run(masked):
        zeros = jnp.zeros((8, LANES), jnp.float32)
        acc_pt, acc_p, acc_t = jax.lax.fori_loop(
            0, groups, make_body(masked), (zeros, zeros, zeros), unroll=unroll)
        pt_ref[...] += acc_pt       # sum(p * t)
        p_ref[...] += acc_p         # sum(p)
        tsum_ref[...] += acc_t      # sum(t)

    if need_mask:
        last = pl.num_programs(0) - 1

        @pl.when(i == last)          # only the last block can contain padding
        def _masked():
            run(True)

        @pl.when(i != last)          # interior blocks: unmasked fast path
        def _unmasked():
            run(False)
    else:
        run(False)


def _jnp_loss(x, t, smooth, alpha, beta, gamma):
    """Plain-XLA reference / small-input fallback (torch formula verbatim)."""
    p = jax.nn.sigmoid(x.astype(jnp.float32)).ravel()
    tt = t.astype(jnp.float32).ravel()
    tp = jnp.sum(p * tt)
    fp = jnp.sum((1.0 - tt) * p)
    fn = jnp.sum(tt * (1.0 - p))
    tversky = (tp + smooth) / (tp + alpha * fp + beta * fn + smooth)
    return (1.0 - tversky) ** gamma


def focal_tversky_loss(inputs, targets, smooth=1.0, alpha=0.5, beta=0.5,
                       gamma=1.0, *, use_pallas=None,
                       max_block_rows=MAX_BLOCK_ROWS):
    """Matches FocalTverskyLoss.forward: sigmoid -> flatten -> TP/FP/FN -> loss."""
    x = jnp.ravel(inputs)           # no dtype cast here: cast happens in-kernel
    t = jnp.ravel(targets)
    n = x.shape[0]

    if use_pallas is None:
        use_pallas = n * jnp.dtype(x.dtype).itemsize >= SMALL_INPUT_BYTES
    if not use_pallas:
        return _jnp_loss(x, t, smooth, alpha, beta, gamma)

    if t.dtype == jnp.bool_:
        t = t.astype(jnp.float32)

    # Lane alignment: pad to the next multiple of 128 (8-row floor so the
    # accumulator tiles are full vregs). Pad values are irrelevant: they are
    # masked element-wise in the last block.
    min_elems = 8 * LANES
    padded = max(min_elems, ((n + LANES - 1) // LANES) * LANES)
    if padded != n:
        # TODO(synk): this (<=127 + floor) pad still costs a full-array copy in
        # XLA for non-128-multiple n; avoiding it needs a relayout-free 1-D
        # (n,) -> (rows,128) in-kernel reshape.
        pad = padded - n
        x = jnp.pad(x, (0, pad))
        t = jnp.pad(t, (0, pad))

    rows = padded // LANES
    x2 = x.reshape(rows, LANES)
    t2 = t.reshape(rows, LANES)

    block_rows = max(8, min(max_block_rows, (rows // 8) * 8))   # multiple of 8
    num_blocks = pl.cdiv(rows, block_rows)
    # Mask only if the last block contains padded / out-of-bounds elements.
    need_mask = (num_blocks * block_rows * LANES != n)

    kernel = functools.partial(
        _focal_tversky_partials_kernel,
        block_rows=block_rows, n_valid=n, need_mask=need_mask,
        unroll=min(8, block_rows // 8))

    acc_shape = jax.ShapeDtypeStruct((8, LANES), jnp.float32)
    acc_spec = pl.BlockSpec((8, LANES), lambda i: (0, 0))

    pt_p, p_p, t_p = pl.pallas_call(
        kernel,
        out_shape=(acc_shape, acc_shape, acc_shape),
        grid_spec=pltpu.PrefetchScalarGridSpec(
            num_scalar_prefetch=0,
            grid=(num_blocks,),
            in_specs=[
                pl.BlockSpec((block_rows, LANES), lambda i: (i, 0)),
                pl.BlockSpec((block_rows, LANES), lambda i: (i, 0)),
            ],
            out_specs=(acc_spec, acc_spec, acc_spec),
        ),
        compiler_params=pltpu.CompilerParams(
            dimension_semantics=("arbitrary",),
            vmem_limit_bytes=VMEM_LIMIT_BYTES),
    )(x2, t2)

    # Tiny epilogue: lane reduction + scalar Tversky / focal math (non-linear,
    # so it must happen after the full reduce).
    tp = jnp.sum(pt_p)
    sp = jnp.sum(p_p)
    st = jnp.sum(t_p)
    fp = sp - tp
    fn = st - tp
    tversky = (tp + smooth) / (tp + alpha * fp + beta * fn + smooth)
    return (1.0 - tversky) ** gamma


if __name__ == "__main__":
    key = jax.random.PRNGKey(0)
    k1, k2, k3, k4, k5, k6 = jax.random.split(key, 6)

    # 1) Small NCHW logits + binary targets, forced through the Pallas kernel.
    inputs = jax.random.normal(k1, (2, 4, 16, 16), dtype=jnp.float32)
    targets = (jax.random.uniform(k2, (2, 4, 16, 16)) > 0.5).astype(jnp.float32)
    loss = focal_tversky_loss(inputs, targets, use_pallas=True)
    jax.block_until_ready(loss)
    ref = _jnp_loss(inputs, targets, 1.0, 0.5, 0.5, 1.0)
    assert jnp.allclose(loss, ref, atol=1e-5, rtol=1e-5), (loss, ref)

    # 2) Non-128-aligned shape: exercises lane pad + masked last block.
    inputs2 = jax.random.normal(k3, (2, 3, 17, 13), dtype=jnp.float32)
    targets2 = (jax.random.uniform(k4, (2, 3, 17, 13)) > 0.5).astype(jnp.float32)
    loss2 = focal_tversky_loss(inputs2, targets2, use_pallas=True)
    jax.block_until_ready(loss2)
    ref2 = _jnp_loss(inputs2, targets2, 1.0, 0.5, 0.5, 1.0)
    assert jnp.allclose(loss2, ref2, atol=1e-5, rtol=1e-5), (loss2, ref2)

    # 3) Multi-block accumulation path (artificially small blocks) with
    #    non-default Tversky parameters.
    inputs3 = jax.random.normal(k5, (2, 4, 64, 96), dtype=jnp.float32)
    targets3 = (jax.random.uniform(k6, (2, 4, 64, 96)) > 0.5).astype(jnp.float32)
    loss3 = focal_tversky_loss(inputs3, targets3, smooth=1.0, alpha=0.7,
                               beta=0.3, gamma=2.0, use_pallas=True,
                               max_block_rows=64)
    jax.block_until_ready(loss3)
    ref3 = _jnp_loss(inputs3, targets3, 1.0, 0.7, 0.3, 2.0)
    assert jnp.allclose(loss3, ref3, atol=1e-5, rtol=1e-5), (loss3, ref3)

    # 4) Auto path (tiny input -> jnp fallback) agrees as well.
    loss4 = focal_tversky_loss(inputs, targets)
    jax.block_until_ready(loss4)
    assert jnp.allclose(loss4, ref, atol=1e-5, rtol=1e-5), (loss4, ref)

    print("KERNEL_OK")
</pallas_src>

<mosaic_0001>
module attributes {stable_mosaic.version = 11 : i64} {
  func.func @_focal_tversky_partials_kernel(%arg0: i32, %arg1: memref<16x128xf32, #tpu.memory_space<vmem>>, %arg2: memref<16x128xf32, #tpu.memory_space<vmem>>, %arg3: memref<8x128xf32, #tpu.memory_space<vmem>>, %arg4: memref<8x128xf32, #tpu.memory_space<vmem>>, %arg5: memref<8x128xf32, #tpu.memory_space<vmem>>) attributes {dimension_semantics = [#tpu.dimension_semantics<arbitrary>], iteration_bounds = array<i64: 1>, scalar_prefetch = 0 : i64, scratch_operands = 0 : i64, tpu.core_type = #tpu.core_type<tc>, window_params = [{transform_indices = @transform_0, window_bounds = array<i64: 16, 128>}, {transform_indices = @transform_1, window_bounds = array<i64: 16, 128>}, {pipeline_mode = #tpu.pipeline_mode<synchronous>, transform_indices = @transform_2, window_bounds = array<i64: 8, 128>}, {pipeline_mode = #tpu.pipeline_mode<synchronous>, transform_indices = @transform_3, window_bounds = array<i64: 8, 128>}, {pipeline_mode = #tpu.pipeline_mode<synchronous>, transform_indices = @transform_4, window_bounds = array<i64: 8, 128>}]} {
    %c0_i32 = arith.constant 0 : i32
    %0 = arith.cmpi eq, %arg0, %c0_i32 : i32
    %1 = arith.extui %0 : i1 to i32
    %c0_i32_0 = arith.constant 0 : i32
    %2 = arith.cmpi ne, %1, %c0_i32_0 : i32
    scf.if %2 {
      %cst_20 = arith.constant 0.000000e+00 : f32
      %43 = vector.broadcast %cst_20 : f32 to vector<8x128xf32>
      %c0_21 = arith.constant 0 : index
      %c0_22 = arith.constant 0 : index
      %44 = vector.load %arg3[%c0_21, %c0_22] : memref<8x128xf32, #tpu.memory_space<vmem>>, vector<8x128xf32>
      tpu.vector_store %arg3[%c0_21, %c0_22], %43 {strides = array<i32>} : memref<8x128xf32, #tpu.memory_space<vmem>>, vector<8x128xf32>,
      %cst_23 = arith.constant 0.000000e+00 : f32
      %45 = vector.broadcast %cst_23 : f32 to vector<8x128xf32>
      %c0_24 = arith.constant 0 : index
      %c0_25 = arith.constant 0 : index
      %46 = vector.load %arg4[%c0_24, %c0_25] : memref<8x128xf32, #tpu.memory_space<vmem>>, vector<8x128xf32>
      tpu.vector_store %arg4[%c0_24, %c0_25], %45 {strides = array<i32>} : memref<8x128xf32, #tpu.memory_space<vmem>>, vector<8x128xf32>,
      %cst_26 = arith.constant 0.000000e+00 : f32
      %47 = vector.broadcast %cst_26 : f32 to vector<8x128xf32>
      %c0_27 = arith.constant 0 : index
      %c0_28 = arith.constant 0 : index
      %48 = vector.load %arg5[%c0_27, %c0_28] : memref<8x128xf32, #tpu.memory_space<vmem>>, vector<8x128xf32>
      tpu.vector_store %arg5[%c0_27, %c0_28], %47 {strides = array<i32>} : memref<8x128xf32, #tpu.memory_space<vmem>>, vector<8x128xf32>,
    } else {
    }
    %cst = arith.constant 0.000000e+00 : f32
    %3 = vector.broadcast %cst : f32 to vector<8x128xf32>
    %c0_i32_1 = arith.constant 0 : i32
    %c8_i32 = arith.constant 8 : i32
    %4 = arith.muli %c0_i32_1, %c8_i32 : i32
    %5 = tpu.assume_multiple %4, 8 : i32
    %6 = arith.index_cast %5 : i32 to index
    %c0 = arith.constant 0 : index
    %7 = vector.load %arg1[%6, %c0] : memref<16x128xf32, #tpu.memory_space<vmem>>, vector<8x128xf32>
    %8 = arith.index_cast %5 : i32 to index
    %c0_2 = arith.constant 0 : index
    %9 = vector.load %arg2[%8, %c0_2] : memref<16x128xf32, #tpu.memory_space<vmem>>, vector<8x128xf32>
    %10 = arith.negf %7 : vector<8x128xf32>
    %11 = math.exp %10 : vector<8x128xf32>
    %cst_3 = arith.constant 1.000000e+00 : f32
    %12 = vector.broadcast %cst_3 : f32 to vector<8x128xf32>
    %13 = arith.addf %12, %11 : vector<8x128xf32>
    %14 = arith.divf %12, %13 : vector<8x128xf32>
    %15 = arith.mulf %14, %9 : vector<8x128xf32>
    %16 = arith.addf %3, %15 : vector<8x128xf32>
    %17 = arith.addf %3, %14 : vector<8x128xf32>
    %18 = arith.addf %3, %9 : vector<8x128xf32>
    %c1_i32 = arith.constant 1 : i32
    %c8_i32_4 = arith.constant 8 : i32
    %19 = arith.muli %c1_i32, %c8_i32_4 : i32
    %20 = tpu.assume_multiple %19, 8 : i32
    %21 = arith.index_cast %20 : i32 to index
    %c0_5 = arith.constant 0 : index
    %22 = vector.load %arg1[%21, %c0_5] : memref<16x128xf32, #tpu.memory_space<vmem>>, vector<8x128xf32>
    %23 = arith.index_cast %20 : i32 to index
    %c0_6 = arith.constant 0 : index
    %24 = vector.load %arg2[%23, %c0_6] : memref<16x128xf32, #tpu.memory_space<vmem>>, vector<8x128xf32>
    %25 = arith.negf %22 : vector<8x128xf32>
    %26 = math.exp %25 : vector<8x128xf32>
    %cst_7 = arith.constant 1.000000e+00 : f32
    %27 = vector.broadcast %cst_7 : f32 to vector<8x128xf32>
    %28 = arith.addf %27, %26 : vector<8x128xf32>
    %29 = arith.divf %27, %28 : vector<8x128xf32>
    %30 = arith.mulf %29, %24 : vector<8x128xf32>
    %31 = arith.addf %16, %30 : vector<8x128xf32>
    %32 = arith.addf %17, %29 : vector<8x128xf32>
    %33 = arith.addf %18, %24 : vector<8x128xf32>
    %c2_i32 = arith.constant 2 : i32
    %c0_8 = arith.constant 0 : index
    %c0_9 = arith.constant 0 : index
    %34 = vector.load %arg3[%c0_8, %c0_9] : memref<8x128xf32, #tpu.memory_space<vmem>>, vector<8x128xf32>
    %35 = arith.addf %34, %31 : vector<8x128xf32>
    %c0_10 = arith.constant 0 : index
    %c0_11 = arith.constant 0 : index
    %36 = vector.load %arg3[%c0_10, %c0_11] : memref<8x128xf32, #tpu.memory_space<vmem>>, vector<8x128xf32>
    tpu.vector_store %arg3[%c0_10, %c0_11], %35 {strides = array<i32>} : memref<8x128xf32, #tpu.memory_space<vmem>>, vector<8x128xf32>,
    %c0_12 = arith.constant 0 : index
    %c0_13 = arith.constant 0 : index
    %37 = vector.load %arg4[%c0_12, %c0_13] : memref<8x128xf32, #tpu.memory_space<vmem>>, vector<8x128xf32>
    %38 = arith.addf %37, %32 : vector<8x128xf32>
    %c0_14 = arith.constant 0 : index
    %c0_15 = arith.constant 0 : index
    %39 = vector.load %arg4[%c0_14, %c0_15] : memref<8x128xf32, #tpu.memory_space<vmem>>, vector<8x128xf32>
    tpu.vector_store %arg4[%c0_14, %c0_15], %38 {strides = array<i32>} : memref<8x128xf32, #tpu.memory_space<vmem>>, vector<8x128xf32>,
    %c0_16 = arith.constant 0 : index
    %c0_17 = arith.constant 0 : index
    %40 = vector.load %arg5[%c0_16, %c0_17] : memref<8x128xf32, #tpu.memory_space<vmem>>, vector<8x128xf32>
    %41 = arith.addf %40, %33 : vector<8x128xf32>
    %c0_18 = arith.constant 0 : index
    %c0_19 = arith.constant 0 : index
    %42 = vector.load %arg5[%c0_18, %c0_19] : memref<8x128xf32, #tpu.memory_space<vmem>>, vector<8x128xf32>
    tpu.vector_store %arg5[%c0_18, %c0_19], %41 {strides = array<i32>} : memref<8x128xf32, #tpu.memory_space<vmem>>, vector<8x128xf32>,
    return
  }
  func.func @transform_0(%arg0: i32) -> (i32, i32) {
    %c0_i32 = arith.constant 0 : i32
    %c0_i32_0 = arith.constant 0 : i32
    return %arg0, %c0_i32 : i32, i32
  }
  func.func @transform_1(%arg0: i32) -> (i32, i32) {
    %c0_i32 = arith.constant 0 : i32
    %c0_i32_0 = arith.constant 0 : i32
    return %arg0, %c0_i32 : i32, i32
  }
  func.func @transform_2(%arg0: i32) -> (i32, i32) {
    %c0_i32 = arith.constant 0 : i32
    %c0_i32_0 = arith.constant 0 : i32
    %c0_i32_1 = arith.constant 0 : i32
    return %c0_i32, %c0_i32_0 : i32, i32
  }
  func.func @transform_3(%arg0: i32) -> (i32, i32) {
    %c0_i32 = arith.constant 0 : i32
    %c0_i32_0 = arith.constant 0 : i32
    %c0_i32_1 = arith.constant 0 : i32
    return %c0_i32, %c0_i32_0 : i32, i32
  }
  func.func @transform_4(%arg0: i32) -> (i32, i32) {
    %c0_i32 = arith.constant 0 : i32
    %c0_i32_0 = arith.constant 0 : i32
    %c0_i32_1 = arith.constant 0 : i32
    return %c0_i32, %c0_i32_0 : i32, i32
  }
}

</mosaic_0001>

<bundles_post_ra>
// kernel: tpu_custom_call.1
= control target key start
LH: loop header
LB: loop body
LE: loop exit
PB: predicated region body
PF: predicated region fallthrough
CT: control target
= control target key end

     0   :  { %10 = vsyncpa [#allocation3], 0  ;;  %s358_s0 = inlined_call_operand.hbm [shape: f32[16,128], index: 0, kind: input, shape index: {}]   ;;  %s359_s1 = inlined_call_operand.hbm [shape: f32[16,128], index: 1, kind: input, shape index: {}]   ;;  %s360_s2 = inlined_call_operand.hbm [shape: f32[8,128], index: 2, kind: output, shape index: {0}]   ;;  %s361_s3 = inlined_call_operand.hbm [shape: f32[8,128], index: 3, kind: output, shape index: {1}]   ;;  %s362_s4 = inlined_call_operand.hbm [shape: f32[8,128], index: 4, kind: output, shape index: {2}]  }
   0x1   :  { %11 = vsyncpa [#allocation6], 0 }
   0x2   :  { %12 = vsyncpa [#allocation4], 0 }
   0x3   :  { %13 = vsyncpa [#allocation9], 0  ;;  %s18_s17 = sshll.u32 %s358_s0, 4  ;;  %s311_s18 = smov [#allocation2]   ;;  %s19_s17 = int_to_ptr.hbm [resolvable:$true] %s18_s17 }
   0x4   :  { %s20_s19 = sshll.u32 %s311_s18, 4  ;;  %s31_s22 = sshll.u32 %s359_s1, 4  ;;  %s21_s19 = int_to_ptr.vmem [resolvable:$true] %s20_s19  ;;  %s32_s22 = int_to_ptr.hbm [resolvable:$true] %s31_s22 }
   0x5   :  { %s312_s23 = smov 128   ;;  %s313_s24 = smov 8  }
   0x6   :  { %26 = dma.hbm_to_vmem [thread:$0]  %s19_s17, 256, %s21_s19, [#allocation3], %s312_s23, %s312_s23, %s313_s24  }
   0x7   :  { %s314_s25 = smov [#allocation5]  }
   0x8   :  { %s33_s26 = sshll.u32 %s314_s25, 4  ;;  %s34_s26 = int_to_ptr.vmem [resolvable:$true] %s33_s26 }
   0x9   :  { %39 = dma.hbm_to_vmem [thread:$0]  %s32_s22, 256, %s34_s26, [#allocation6], %s312_s23, %s312_s23, %s313_s24  }
   0xa   :  { %303 = dma.done.wait [#allocation3], 256  }
   0xb   :  { %304 = vsyncadd [#allocation3], 4294967040 }
   0xc   :  { %305 = dma.done.wait [#allocation6], 256  }
   0xd   :  { %306 = vsyncadd [#allocation6], 4294967040  ;;  %v55_v0 = vld [vmem:[#allocation2] sm:$0xff]  ;;  %v81_v1 = vld [vmem:[#allocation2 + $0x8] sm:$0xff]  ;;  %s315_s0 = smov [#allocation8]   ;;  %s134_s29 = sshll.u32 %s361_s3, 4  ;;  %s135_s29 = int_to_ptr.hbm [resolvable:$true] %s134_s29 }
   0xe   :  { %v165_v2 = vmul.f32 -1.442695, %v55_v0  ;;  %v166_v3 = vmul.f32 -1.442695, %v81_v1  ;;  %v56_v4 = vld [vmem:[#allocation5] sm:$0xff]  ;;  %v83_v5 = vld [vmem:[#allocation5 + $0x8] sm:$0xff] }
   0xf   :  { %v106_v6 = vadd.f32 %v83_v5, %v56_v4  ;;  %s132_s1 = sshll.u32 %s315_s0, 4  ;;  %s316_s30 = smov [#allocation10]   ;;  %s133_s1 = int_to_ptr.vmem [resolvable:$true] %s132_s1 }
  0x10   :  { %175 = vpow2.f32 %v165_v2  ;;  %s143_s5 = sshll.u32 %s316_s30, 4  ;;  %s145_s8 = sshll.u32 %s362_s4, 4  ;;  %s144_s5 = int_to_ptr.vmem [resolvable:$true] %s143_s5  ;;  %s146_s8 = int_to_ptr.hbm [resolvable:$true] %s145_s8 }
  0x11   :  { %177 = vpow2.f32 %v166_v3  ;;  %115 = vst [vmem:[#allocation10] sm:$0xff] %v106_v6  ;;  %s317_s9 = smov [#allocation7]   ;;  %s123_s13 = sshll.u32 %s360_s2, 4  ;;  %s124_s13 = int_to_ptr.hbm [resolvable:$true] %s123_s13 }
  0x12   :  { %s121_s10 = sshll.u32 %s317_s9, 4  ;;  %s122_s10 = int_to_ptr.vmem [resolvable:$true] %s121_s10 }
  0x16   :  { %v176_v7 = vpop.eup %175 }
  0x17   :  { %v178_v8 = vpop.eup %177  ;;  %v60_v9 = vadd.f32 1.0, %v176_v7 }
  0x18   :  { %v87_v10 = vadd.f32 1.0, %v178_v8 }
  0x19   :  { %179 = vrcp.f32 %v60_v9  ;;  %vm66_vm0 = vweird.f32 %v60_v9  ;;  %v72_v14 = vand.u32 2147483648, %v60_v9  ;;  %v70_v17 = vand.u32 2147483647, %v60_v9 }
  0x1a   :  { %181 = vrcp.f32 %v87_v10  ;;  %v99_v18 = vand.u32 2147483648, %v87_v10  ;;  %vm93_vm2 = vweird.f32 %v87_v10  ;;  %v97_v20 = vand.u32 2147483647, %v87_v10 }
  0x1b   :  { %v73_v22 = vor.u32 1.1754944e-38, %v72_v14  ;;  %vm71_vm5 = vcmp.eq.f32.partialorder %v70_v17, 8.507059e+37 }
  0x1c   :  { %v100_v25 = vor.u32 1.1754944e-38, %v99_v18  ;;  %vm98_vm7 = vcmp.eq.f32.partialorder %v97_v20, 8.507059e+37 }
  0x1f   :  { %v180_v11 = vpop.eup %179 }
  0x20   :  { %v182_v12 = vpop.eup %181  ;;  %v62_v13 = vmul.f32 %v180_v11, %v60_v9  ;;  %vm67_vm1 = vweird.f32 %v180_v11 }
  0x21   :  { %v89_v15 = vmul.f32 %v182_v12, %v87_v10  ;;  %vm94_vm3 = vweird.f32 %v182_v12  ;;  %vm68_vm4 = vmor %vm66_vm0, %vm67_vm1 }
  0x22   :  { %v63_v16 = vsub.f32 1.0, %v62_v13  ;;  %vm95_vm6 = vmor %vm93_vm2, %vm94_vm3 }
  0x23   :  { %v90_v19 = vsub.f32 1.0, %v89_v15 }
  0x24   :  { %v64_v21 = vmul.f32 %v180_v11, %v63_v16 }
  0x25   :  { %v91_v23 = vmul.f32 %v182_v12, %v90_v19 }
  0x26   :  { %v65_v24 = vadd.f32 %v180_v11, %v64_v21 }
  0x27   :  { %v92_v26 = vadd.f32 %v182_v12, %v91_v23 }
  0x28   :  { %v69_v27 = vsel %vm68_vm4, %v180_v11, %v65_v24 }
  0x29   :  { %v74_v28 = vsel %vm71_vm5, %v73_v22, %v69_v27  ;;  %v96_v29 = vsel %vm95_vm6, %v182_v12, %v92_v26 }
  0x2a   :  { %v101_v30 = vsel %vm98_vm7, %v100_v25, %v96_v29  ;;  %v76_v31 = vmul.f32 %v74_v28, %v56_v4 }
  0x2b   :  { %v105_v32 = vadd.f32 %v101_v30, %v74_v28  ;;  %v103_v33 = vmul.f32 %v101_v30, %v83_v5 }
  0x2d   :  { %v104_v34 = vadd.f32 %v103_v33, %v76_v31  ;;  %112 = vst [vmem:[#allocation8] sm:$0xff] %v105_v32 }
  0x2e   :  { %137 = dma.vmem_to_hbm [thread:$0]  %s133_s1, 128, %s135_s29, [#allocation9]  }
  0x2f   :  { %109 = vst [vmem:[#allocation7] sm:$0xff] %v104_v34  ;;  %148 = dma.vmem_to_hbm [thread:$0]  %s144_s5, 128, %s146_s8, [#allocation9]  }
  0x30   :  { %126 = dma.vmem_to_hbm [thread:$0]  %s122_s10, 128, %s124_s13, [#allocation4]  }
  0x31   :  { %307 = dma.done.wait [#allocation4], 128  }
  0x32   :  { %308 = vsyncadd [#allocation4], 4294967168 }
  0x33   :  { %309 = dma.done.wait [#allocation9], 256  }
  0x34   :  { %310 = vsyncadd [#allocation9], 4294967040 }
  0x35   :  { %161 = vsyncpa [#allocation3], 1 }
  0x36   :  { %162 = vsyncpa [#allocation6], 1 }
  0x37   :  { %163 = vsyncpa [#allocation4], 1 }
  0x38   :  { %164 = vsyncpa [#allocation9], 1 }

</bundles_post_ra>
